<compile_context>
chip_gen: v5e
topology: v5e:2x2
jax: 0.10.0
libtpu: 0.0.40
codegen_flags: <defaults>
</compile_context>

<pallas_src>
import functools

import jax
import jax.numpy as jnp
from jax import lax
from jax.experimental import pallas as pl
from jax.experimental.pallas import tpu as pltpu


# ----------------------------- fused kernel ---------------------------------


def _fused_gcn_gat_kernel(adj_ref, d_ref, x_ref, w1_ref, b1_ref, wg_ref,
                          asrc_ref, adst_ref, bg_ref, o_ref,
                          xws_ref, hw_ref, as_ref, *, heads, fp, tile_i):
    ph = pl.program_id(0)                       # 0 = GCN phase, 1 = GAT phase
    t = pl.program_id(1)                        # row-tile index
    row0 = pl.multiple_of(t * tile_i, tile_i)

    # ---------------- phase 0: GCNConv + ReLU, stage h @ Wg ----------------
    @pl.when(jnp.logical_and(ph == 0, t == 0))
    def _():
        # X W1 pre-scaled by source-side deg^-1/2 (global), once for all nodes.
        xw = jnp.dot(x_ref[...], w1_ref[...], preferred_element_type=jnp.float32)
        xws_ref[...] = (d_ref[...] * xw).astype(jnp.bfloat16)

    @pl.when(ph == 0)
    def _():
        adj = adj_ref[...]                                       # [tile, N] bf16
        agg = jnp.dot(adj, xws_ref[...],
                      preferred_element_type=jnp.float32)        # [tile, HID_P]
        d_t = d_ref[pl.ds(row0, tile_i), :]                      # [tile, 1]
        h_t = jnp.maximum(d_t * agg + b1_ref[...], 0.0)          # GCN + ReLU
        # TODO(synk): training-mode dropout (p=0.5) via pltpu.prng_random_bits.
        hw_ref[pl.ds(row0, tile_i), :] = jnp.dot(
            h_t, wg_ref[...], preferred_element_type=jnp.float32)

    # ---------------- phase 1: GATConv (multi-head) + ReLU -----------------
    @pl.when(jnp.logical_and(ph == 1, t == 0))
    def _():
        # Source-side attention logits for all nodes & heads at once: [hp, N].
        as_ref[...] = lax.dot_general(
            asrc_ref[...], hw_ref[...], (((1,), (1,)), ((), ())),
            preferred_element_type=jnp.float32)

    @pl.when(ph == 1)
    def _():
        adj = adj_ref[...]                                        # [tile, N] bf16
        neg = jnp.where(adj > 0, 0.0, -1e30).astype(jnp.float32)  # non-edge bias
        for hd in range(heads):                                   # static unroll
            lo = hd * fp
            hh_all = hw_ref[:, lo:lo + fp]                        # [N, fp]
            hh_t = hw_ref[pl.ds(row0, tile_i), lo:lo + fp]        # [tile, fp]
            # dst-side logit: VPU multiply + cross-lane reduce (no MXU matvec).
            a_d = jnp.sum(hh_t * adst_ref[hd:hd + 1, :], axis=-1, keepdims=True)
            e = a_d + as_ref[hd:hd + 1, :]                        # [tile, N]
            e = jnp.where(e > 0, e, 0.2 * e)                      # LeakyReLU(0.2)
            e = e + neg
            e = e - jnp.max(e, axis=-1, keepdims=True)
            p = jnp.exp(e)
            inv = pl.reciprocal(jnp.sum(p, axis=-1, keepdims=True), approx=True)
            acc = jnp.dot(p.astype(jnp.bfloat16), hh_all.astype(jnp.bfloat16),
                          preferred_element_type=jnp.float32)     # [tile, fp]
            # Lane-dense, 128-aligned full-width store per head.
            o_ref[:, lo:lo + fp] = jnp.maximum(
                acc * inv + bg_ref[:, lo:lo + fp], 0.0)


# ----------------------------- wrappers -------------------------------------


def _round_up(v, m):
    return -(-v // m) * m


def precompute_graph(edge_index, num_nodes):
    """Dense deduped self-looped adjacency (bf16), deg^-1/2, and tiling choice.

    Hoist/cache this once per static graph instead of rebuilding per forward.
    NOTE: multi-edges are deduped (differs from PyG if edge_index has repeats).
    """
    n = num_nodes
    src, dst = edge_index[0], edge_index[1]
    adj = jnp.zeros((n, n), jnp.float32).at[dst, src].add(1.0)
    adj = jnp.minimum(adj, 1.0)
    adj = adj.at[jnp.arange(n), jnp.arange(n)].set(1.0)

    # Row tile: biggest tile keeping the double-buffered bf16 adj row-tile
    # under ~24 MiB (safe for v7x's 64 MiB physical VMEM; generous on v5e/v6e).
    n16 = _round_up(n, 16)
    tile = min(256, n16)
    while tile > 16 and 2 * tile * n16 * 2 > (24 << 20):
        tile //= 2
    n_pad = _round_up(n, tile)

    adj_p = jnp.zeros((n_pad, n_pad), jnp.float32).at[:n, :n].set(adj)
    deg = jnp.sum(adj_p, axis=1, keepdims=True)                  # global degrees
    d_is = jnp.where(deg > 0, lax.rsqrt(deg), 0.0)               # [n_pad, 1]
    return {"adj": adj_p.astype(jnp.bfloat16), "d_is": d_is,
            "tile": tile, "n_pad": n_pad, "n": n}


def enhanced_gcn_forward(x, edge_index, params, graph=None):
    """Forward pass of EnhancedGCN (eval mode)."""
    n, in_c = x.shape
    if graph is None:
        graph = precompute_graph(edge_index, n)
    heads, f_out = params["att_src"].shape
    hid = params["w1"].shape[1]
    tile, n_pad = graph["tile"], graph["n_pad"]

    # Pad all feature dims to 128 lanes (per head for the GAT side).
    in_p = _round_up(in_c, 128)
    hid_p = _round_up(hid, 128)
    fp = _round_up(f_out, 128)
    gat_w = heads * fp
    hp = _round_up(heads, 8)

    x_p = jnp.zeros((n_pad, in_p), jnp.float32).at[:n, :in_c].set(x)
    w1_p = jnp.zeros((in_p, hid_p), jnp.float32).at[:in_c, :hid].set(params["w1"])
    b1_p = jnp.zeros((1, hid_p), jnp.float32).at[:, :hid].set(params["b1"])
    wg_p = jnp.zeros((hid_p, gat_w), jnp.float32)
    asrc = jnp.zeros((hp, gat_w), jnp.float32)     # block-diagonal att_src
    adst = jnp.zeros((hp, fp), jnp.float32).at[:heads, :f_out].set(params["att_dst"])
    bg_p = jnp.zeros((1, gat_w), jnp.float32)
    for hd in range(heads):
        lo = hd * fp
        wg_p = wg_p.at[:hid, lo:lo + f_out].set(
            params["wg"][:, hd * f_out:(hd + 1) * f_out])
        asrc = asrc.at[hd, lo:lo + f_out].set(params["att_src"][hd])
        bg_p = bg_p.at[0, lo:lo + f_out].set(
            params["bg"][0, hd * f_out:(hd + 1) * f_out])

    num_t = n_pad // tile
    kern = functools.partial(_fused_gcn_gat_kernel, heads=heads, fp=fp, tile_i=tile)

    out_pad = pl.pallas_call(
        kern,
        out_shape=jax.ShapeDtypeStruct((n_pad, gat_w), jnp.float32),
        grid_spec=pltpu.PrefetchScalarGridSpec(
            num_scalar_prefetch=0,
            grid=(2, num_t),                                       # (phase, tile)
            in_specs=[
                pl.BlockSpec((tile, n_pad), lambda ph, t: (t, 0)),   # adj rows
                pl.BlockSpec((n_pad, 1), lambda ph, t: (0, 0)),      # deg^-1/2
                pl.BlockSpec((n_pad, in_p), lambda ph, t: (0, 0)),   # x
                pl.BlockSpec((in_p, hid_p), lambda ph, t: (0, 0)),   # W1
                pl.BlockSpec((1, hid_p), lambda ph, t: (0, 0)),      # b1
                pl.BlockSpec((hid_p, gat_w), lambda ph, t: (0, 0)),  # Wg
                pl.BlockSpec((hp, gat_w), lambda ph, t: (0, 0)),     # att_src
                pl.BlockSpec((hp, fp), lambda ph, t: (0, 0)),        # att_dst
                pl.BlockSpec((1, gat_w), lambda ph, t: (0, 0)),      # bg
            ],
            # phase 0 never writes; keep its (unwritten) block pinned at 0 so no
            # intermediate writebacks happen until phase 1 produces real data.
            out_specs=pl.BlockSpec((tile, gat_w), lambda ph, t: (t * ph, 0)),
            scratch_shapes=[
                pltpu.VMEM((n_pad, hid_p), jnp.bfloat16),   # d-scaled X W1
                pltpu.VMEM((n_pad, gat_w), jnp.float32),    # h @ Wg (all nodes)
                pltpu.VMEM((hp, n_pad), jnp.float32),       # src attention logits
            ]),
        compiler_params=pltpu.CompilerParams(
            # Row axis must stay sequential: phase-1 tiles depend on every
            # phase-0 tile via the persistent VMEM scratches.
            dimension_semantics=("arbitrary", "arbitrary"),
            vmem_limit_bytes=48 * 1024 * 1024),
    )(graph["adj"], graph["d_is"], x_p, w1_p, b1_p, wg_p, asrc, adst, bg_p)

    # Strip node/lane padding: per-head 128-wide blocks -> heads*f_out columns.
    return jnp.concatenate(
        [out_pad[:n, hd * fp:hd * fp + f_out] for hd in range(heads)], axis=-1)


# ----------------------------- reference (pure jnp) --------------------------


def _reference_forward(x, edge_index, params):
    """Pure-JAX reference mirroring the kernel's bf16 matmul policy."""
    n = x.shape[0]
    heads, f_out = params["att_src"].shape
    src, dst = edge_index[0], edge_index[1]
    adj = jnp.zeros((n, n), jnp.float32).at[dst, src].add(1.0)
    adj = jnp.minimum(adj, 1.0)
    adj = adj.at[jnp.arange(n), jnp.arange(n)].set(1.0)
    deg = jnp.sum(adj, axis=1, keepdims=True)
    d = jnp.where(deg > 0, lax.rsqrt(deg), 0.0)

    xws = (d * (x @ params["w1"])).astype(jnp.bfloat16)
    agg = jnp.dot(adj.astype(jnp.bfloat16), xws, preferred_element_type=jnp.float32)
    h = jnp.maximum(d * agg + params["b1"], 0.0)
    hw = h @ params["wg"]

    outs = []
    for hd in range(heads):
        hh = hw[:, hd * f_out:(hd + 1) * f_out]
        a_s = hh @ params["att_src"][hd]
        a_d = hh @ params["att_dst"][hd]
        e = a_d[:, None] + a_s[None, :]
        e = jnp.where(e > 0, e, 0.2 * e)
        e = jnp.where(adj > 0, e, -1e30)
        p = jax.nn.softmax(e, axis=1)
        o = jnp.dot(p.astype(jnp.bfloat16), hh.astype(jnp.bfloat16),
                    preferred_element_type=jnp.float32)
        outs.append(o + params["bg"][:, hd * f_out:(hd + 1) * f_out])
    return jnp.maximum(jnp.concatenate(outs, axis=-1), 0.0)


# ----------------------------- params / main --------------------------------


def _glorot(key, shape):
    fan_in, fan_out = shape[0], shape[1]
    lim = (6.0 / (fan_in + fan_out)) ** 0.5
    return jax.random.uniform(key, shape, jnp.float32, -lim, lim)


def init_params(key, in_channels, out_channels, heads):
    k1, k2, k3, k4 = jax.random.split(key, 4)
    hid = 2 * out_channels
    return {
        # GCNConv(in_channels, 2*out_channels)
        "w1": _glorot(k1, (in_channels, hid)),
        "b1": jnp.zeros((1, hid), jnp.float32),
        # GATConv(2*out_channels, out_channels, heads=3, concat=True)
        "wg": _glorot(k2, (hid, heads * out_channels)),
        "att_src": _glorot(k3, (heads, out_channels)),
        "att_dst": _glorot(k4, (heads, out_channels)),
        "bg": jnp.zeros((1, heads * out_channels), jnp.float32),
    }


if __name__ == "__main__":
    N = 16            # nodes
    IN_C = 8          # in_channels
    OUT_C = 8         # out_channels (GAT per-head dim); final dim = 3 * OUT_C
    HEADS = 3

    key = jax.random.PRNGKey(0)
    kx, kp = jax.random.split(key)
    x = jax.random.normal(kx, (N, IN_C), jnp.float32)

    # Deterministic directed edge list: ring + a few chords (no self loops).
    src = jnp.array(list(range(N)) + [0, 1, 2, 3, 4, 5], dtype=jnp.int32)
    dst = jnp.array([(i + 1) % N for i in range(N)] + [8, 9, 10, 11, 12, 13],
                    dtype=jnp.int32)
    edge_index = jnp.stack([src, dst])                        # [2, E]

    params = init_params(kp, IN_C, OUT_C, HEADS)

    # Graph structure is static: build the dense adjacency / degrees ONCE
    # and reuse it (hoisted out of the per-call forward path).
    graph = precompute_graph(edge_index, N)

    out = enhanced_gcn_forward(x, edge_index, params, graph=graph)
    jax.block_until_ready(out)

    assert out.shape == (N, HEADS * OUT_C) and out.dtype == jnp.float32
    ref = _reference_forward(x, edge_index, params)
    err = float(jnp.max(jnp.abs(out - ref)))
    assert jnp.allclose(out, ref, atol=5e-2, rtol=5e-2), err
    print("KERNEL_OK")
</pallas_src>

<mosaic_0001>
module attributes {stable_mosaic.version = 11 : i64} {
  func.func @_fused_gcn_gat_kernel(%arg0: i32, %arg1: i32, %arg2: memref<16x16xbf16, #tpu.memory_space<vmem>>, %arg3: memref<16x1xf32, #tpu.memory_space<vmem>>, %arg4: memref<16x128xf32, #tpu.memory_space<vmem>>, %arg5: memref<128x128xf32, #tpu.memory_space<vmem>>, %arg6: memref<1x128xf32, #tpu.memory_space<vmem>>, %arg7: memref<128x384xf32, #tpu.memory_space<vmem>>, %arg8: memref<8x384xf32, #tpu.memory_space<vmem>>, %arg9: memref<8x128xf32, #tpu.memory_space<vmem>>, %arg10: memref<1x384xf32, #tpu.memory_space<vmem>>, %arg11: memref<16x384xf32, #tpu.memory_space<vmem>>, %arg12: memref<16x128xbf16, #tpu.memory_space<vmem>>, %arg13: memref<16x384xf32, #tpu.memory_space<vmem>>, %arg14: memref<8x16xf32, #tpu.memory_space<vmem>>) attributes {dimension_semantics = [#tpu.dimension_semantics<arbitrary>, #tpu.dimension_semantics<arbitrary>], iteration_bounds = array<i64: 2, 1>, scalar_prefetch = 0 : i64, scratch_operands = 3 : i64, tpu.core_type = #tpu.core_type<tc>, window_params = [{transform_indices = @transform_0, window_bounds = array<i64: 16, 16>}, {pipeline_mode = #tpu.pipeline_mode<synchronous>, transform_indices = @transform_1, window_bounds = array<i64: 16, 1>}, {pipeline_mode = #tpu.pipeline_mode<synchronous>, transform_indices = @transform_2, window_bounds = array<i64: 16, 128>}, {pipeline_mode = #tpu.pipeline_mode<synchronous>, transform_indices = @transform_3, window_bounds = array<i64: 128, 128>}, {pipeline_mode = #tpu.pipeline_mode<synchronous>, transform_indices = @transform_4, window_bounds = array<i64: 1, 128>}, {pipeline_mode = #tpu.pipeline_mode<synchronous>, transform_indices = @transform_5, window_bounds = array<i64: 128, 384>}, {pipeline_mode = #tpu.pipeline_mode<synchronous>, transform_indices = @transform_6, window_bounds = array<i64: 8, 384>}, {pipeline_mode = #tpu.pipeline_mode<synchronous>, transform_indices = @transform_7, window_bounds = array<i64: 8, 128>}, {pipeline_mode = #tpu.pipeline_mode<synchronous>, transform_indices = @transform_8, window_bounds = array<i64: 1, 384>}, {transform_indices = @transform_9, window_bounds = array<i64: 16, 384>}]} {
    %c16_i32 = arith.constant 16 : i32
    %0 = arith.muli %arg1, %c16_i32 : i32
    %1 = tpu.assume_multiple %0, 16 : i32
    %c0_i32 = arith.constant 0 : i32
    %2 = arith.cmpi eq, %arg0, %c0_i32 : i32
    %c0_i32_0 = arith.constant 0 : i32
    %3 = arith.cmpi eq, %arg1, %c0_i32_0 : i32
    %4 = arith.andi %2, %3 : i1
    %5 = arith.extui %4 : i1 to i32
    %c0_i32_1 = arith.constant 0 : i32
    %6 = arith.cmpi ne, %5, %c0_i32_1 : i32
    scf.if %6 {
      %c0 = arith.constant 0 : index
      %c0_8 = arith.constant 0 : index
      %18 = vector.load %arg4[%c0, %c0_8] : memref<16x128xf32, #tpu.memory_space<vmem>>, vector<16x128xf32>
      %c0_9 = arith.constant 0 : index
      %c0_10 = arith.constant 0 : index
      %19 = vector.load %arg5[%c0_9, %c0_10] : memref<128x128xf32, #tpu.memory_space<vmem>>, vector<128x128xf32>
      %cst = arith.constant dense<0.000000e+00> : vector<16x128xf32>
      %20 = tpu.matmul %18, %19, %cst {dimension_numbers = #tpu.dot_dimension_numbers<[1], [0], [0], [1], [0, 0, 1, 1], [], []>} : vector<16x128xf32>, vector<128x128xf32>, vector<16x128xf32> -> vector<16x128xf32>
      %c0_11 = arith.constant 0 : index
      %c0_12 = arith.constant 0 : index
      %21 = vector.load %arg3[%c0_11, %c0_12] : memref<16x1xf32, #tpu.memory_space<vmem>>, vector<16x1xf32>
      %22 = vector.broadcast %21 : vector<16x1xf32> to vector<16x128xf32>
      %23 = arith.mulf %22, %20 : vector<16x128xf32>
      %24 = arith.truncf %23 : vector<16x128xf32> to vector<16x128xbf16>
      %c0_13 = arith.constant 0 : index
      %c0_14 = arith.constant 0 : index
      %25 = vector.load %arg12[%c0_13, %c0_14] : memref<16x128xbf16, #tpu.memory_space<vmem>>, vector<16x128xbf16>
      tpu.vector_store %arg12[%c0_13, %c0_14], %24 {strides = array<i32>} : memref<16x128xbf16, #tpu.memory_space<vmem>>, vector<16x128xbf16>,
    } else {
    }
    %c0_i32_2 = arith.constant 0 : i32
    %7 = arith.cmpi eq, %arg0, %c0_i32_2 : i32
    %8 = arith.extui %7 : i1 to i32
    %c0_i32_3 = arith.constant 0 : i32
    %9 = arith.cmpi ne, %8, %c0_i32_3 : i32
    scf.if %9 {
      %c0 = arith.constant 0 : index
      %c0_8 = arith.constant 0 : index
      %18 = vector.load %arg2[%c0, %c0_8] : memref<16x16xbf16, #tpu.memory_space<vmem>>, vector<16x16xbf16>
      %c0_9 = arith.constant 0 : index
      %c0_10 = arith.constant 0 : index
      %19 = vector.load %arg12[%c0_9, %c0_10] : memref<16x128xbf16, #tpu.memory_space<vmem>>, vector<16x128xbf16>
      %cst = arith.constant dense<0.000000e+00> : vector<16x128xf32>
      %20 = tpu.matmul %18, %19, %cst {dimension_numbers = #tpu.dot_dimension_numbers<[1], [0], [0], [1], [0, 0, 1, 1], [], []>} : vector<16x16xbf16>, vector<16x128xbf16>, vector<16x128xf32> -> vector<16x128xf32>
      %21 = arith.index_cast %1 : i32 to index
      %c0_11 = arith.constant 0 : index
      %22 = vector.load %arg3[%21, %c0_11] : memref<16x1xf32, #tpu.memory_space<vmem>>, vector<16x1xf32>
      %23 = vector.broadcast %22 : vector<16x1xf32> to vector<16x128xf32>
      %24 = arith.mulf %23, %20 : vector<16x128xf32>
      %c0_12 = arith.constant 0 : index
      %c0_13 = arith.constant 0 : index
      %25 = vector.load %arg6[%c0_12, %c0_13] : memref<1x128xf32, #tpu.memory_space<vmem>>, vector<1x128xf32>
      %26 = vector.broadcast %25 : vector<1x128xf32> to vector<16x128xf32>
      %27 = arith.addf %24, %26 : vector<16x128xf32>
      %cst_14 = arith.constant 0.000000e+00 : f32
      %28 = vector.broadcast %cst_14 : f32 to vector<16x128xf32>
      %29 = arith.maximumf %27, %28 : vector<16x128xf32>
      %c0_15 = arith.constant 0 : index
      %c0_16 = arith.constant 0 : index
      %30 = vector.load %arg7[%c0_15, %c0_16] : memref<128x384xf32, #tpu.memory_space<vmem>>, vector<128x384xf32>
      %cst_17 = arith.constant dense<0.000000e+00> : vector<16x384xf32>
      %31 = tpu.matmul %29, %30, %cst_17 {dimension_numbers = #tpu.dot_dimension_numbers<[1], [0], [0], [1], [0, 0, 1, 1], [], []>} : vector<16x128xf32>, vector<128x384xf32>, vector<16x384xf32> -> vector<16x384xf32>
      %32 = arith.index_cast %1 : i32 to index
      %c0_18 = arith.constant 0 : index
      %33 = vector.load %arg13[%32, %c0_18] : memref<16x384xf32, #tpu.memory_space<vmem>>, vector<16x384xf32>
      tpu.vector_store %arg13[%32, %c0_18], %31 {strides = array<i32>} : memref<16x384xf32, #tpu.memory_space<vmem>>, vector<16x384xf32>,
    } else {
    }
    %c1_i32 = arith.constant 1 : i32
    %10 = arith.cmpi eq, %arg0, %c1_i32 : i32
    %c0_i32_4 = arith.constant 0 : i32
    %11 = arith.cmpi eq, %arg1, %c0_i32_4 : i32
    %12 = arith.andi %10, %11 : i1
    %13 = arith.extui %12 : i1 to i32
    %c0_i32_5 = arith.constant 0 : i32
    %14 = arith.cmpi ne, %13, %c0_i32_5 : i32
    scf.if %14 {
      %c0 = arith.constant 0 : index
      %c0_8 = arith.constant 0 : index
      %18 = vector.load %arg8[%c0, %c0_8] : memref<8x384xf32, #tpu.memory_space<vmem>>, vector<8x384xf32>
      %c0_9 = arith.constant 0 : index
      %c0_10 = arith.constant 0 : index
      %19 = vector.load %arg13[%c0_9, %c0_10] : memref<16x384xf32, #tpu.memory_space<vmem>>, vector<16x384xf32>
      %cst = arith.constant dense<0.000000e+00> : vector<8x16xf32>
      %20 = tpu.matmul %18, %19, %cst {dimension_numbers = #tpu.dot_dimension_numbers<[1], [1], [0], [0], [0, 0, 1, 0], [], []>} : vector<8x384xf32>, vector<16x384xf32>, vector<8x16xf32> -> vector<8x16xf32>
      %c0_11 = arith.constant 0 : index
      %c0_12 = arith.constant 0 : index
      %21 = vector.load %arg14[%c0_11, %c0_12] : memref<8x16xf32, #tpu.memory_space<vmem>>, vector<8x16xf32>
      tpu.vector_store %arg14[%c0_11, %c0_12], %20 {strides = array<i32>} : memref<8x16xf32, #tpu.memory_space<vmem>>, vector<8x16xf32>,
    } else {
    }
    %c1_i32_6 = arith.constant 1 : i32
    %15 = arith.cmpi eq, %arg0, %c1_i32_6 : i32
    %16 = arith.extui %15 : i1 to i32
    %c0_i32_7 = arith.constant 0 : i32
    %17 = arith.cmpi ne, %16, %c0_i32_7 : i32
    scf.if %17 {
      %c0 = arith.constant 0 : index
      %c0_8 = arith.constant 0 : index
      %18 = vector.load %arg2[%c0, %c0_8] : memref<16x16xbf16, #tpu.memory_space<vmem>>, vector<16x16xbf16>
      %cst = arith.constant 0.000000e+00 : bf16
      %19 = vector.broadcast %cst : bf16 to vector<16x16xbf16>
      %20 = arith.cmpf ogt, %18, %19 : vector<16x16xbf16>
      %cst_9 = arith.constant 0.000000e+00 : f32
      %cst_10 = arith.constant -1.000000e+30 : f32
      %21 = vector.broadcast %cst_9 : f32 to vector<16x16xf32>
      %22 = vector.broadcast %cst_10 : f32 to vector<16x16xf32>
      %23 = arith.select %20, %21, %22 : vector<16x16xi1>, vector<16x16xf32>
      %c0_11 = arith.constant 0 : index
      %c0_12 = arith.constant 0 : index
      %24 = vector.load %arg13[%c0_11, %c0_12] : memref<16x384xf32, #tpu.memory_space<vmem>>, vector<16x128xf32>
      %25 = arith.index_cast %1 : i32 to index
      %c0_13 = arith.constant 0 : index
      %26 = vector.load %arg13[%25, %c0_13] : memref<16x384xf32, #tpu.memory_space<vmem>>, vector<16x128xf32>
      %c0_14 = arith.constant 0 : index
      %c0_15 = arith.constant 0 : index
      %27 = vector.load %arg9[%c0_14, %c0_15] : memref<8x128xf32, #tpu.memory_space<vmem>>, vector<1x128xf32>
      %28 = vector.broadcast %27 : vector<1x128xf32> to vector<16x128xf32>
      %29 = arith.mulf %26, %28 : vector<16x128xf32>
      %cst_16 = arith.constant dense<0.000000e+00> : vector<16xf32>
      %30 = vector.multi_reduction <add>, %29, %cst_16 [1] : vector<16x128xf32> to vector<16xf32>
      %31 = vector.shape_cast %30 : vector<16xf32> to vector<16x1xf32>
      %c0_17 = arith.constant 0 : index
      %c0_18 = arith.constant 0 : index
      %32 = vector.load %arg14[%c0_17, %c0_18] : memref<8x16xf32, #tpu.memory_space<vmem>>, vector<1x16xf32>
      %33 = vector.broadcast %31 : vector<16x1xf32> to vector<16x16xf32>
      %34 = vector.broadcast %32 : vector<1x16xf32> to vector<16x16xf32>
      %35 = arith.addf %33, %34 : vector<16x16xf32>
      %cst_19 = arith.constant 0.000000e+00 : f32
      %36 = vector.broadcast %cst_19 : f32 to vector<16x16xf32>
      %37 = arith.cmpf ogt, %35, %36 : vector<16x16xf32>
      %cst_20 = arith.constant 2.000000e-01 : f32
      %38 = vector.broadcast %cst_20 : f32 to vector<16x16xf32>
      %39 = arith.mulf %38, %35 : vector<16x16xf32>
      %40 = arith.select %37, %35, %39 : vector<16x16xi1>, vector<16x16xf32>
      %41 = arith.addf %40, %23 : vector<16x16xf32>
      %cst_21 = arith.constant dense<0xFF800000> : vector<16xf32>
      %42 = vector.multi_reduction <maximumf>, %41, %cst_21 [1] : vector<16x16xf32> to vector<16xf32>
      %43 = vector.shape_cast %42 : vector<16xf32> to vector<16x1xf32>
      %44 = vector.broadcast %43 : vector<16x1xf32> to vector<16x16xf32>
      %45 = arith.subf %41, %44 : vector<16x16xf32>
      %46 = math.exp %45 : vector<16x16xf32>
      %cst_22 = arith.constant dense<0.000000e+00> : vector<16xf32>
      %47 = vector.multi_reduction <add>, %46, %cst_22 [1] : vector<16x16xf32> to vector<16xf32>
      %48 = vector.shape_cast %47 : vector<16xf32> to vector<16x1xf32>
      %49 = tpu.reciprocal %48 {approx = true} : vector<16x1xf32> -> vector<16x1xf32>
      %50 = arith.truncf %46 : vector<16x16xf32> to vector<16x16xbf16>
      %51 = arith.truncf %24 : vector<16x128xf32> to vector<16x128xbf16>
      %cst_23 = arith.constant dense<0.000000e+00> : vector<16x128xf32>
      %52 = tpu.matmul %50, %51, %cst_23 {dimension_numbers = #tpu.dot_dimension_numbers<[1], [0], [0], [1], [0, 0, 1, 1], [], []>} : vector<16x16xbf16>, vector<16x128xbf16>, vector<16x128xf32> -> vector<16x128xf32>
      %53 = vector.broadcast %49 : vector<16x1xf32> to vector<16x128xf32>
      %54 = arith.mulf %52, %53 : vector<16x128xf32>
      %c0_24 = arith.constant 0 : index
      %c0_25 = arith.constant 0 : index
      %55 = vector.load %arg10[%c0_24, %c0_25] : memref<1x384xf32, #tpu.memory_space<vmem>>, vector<1x128xf32>
      %56 = vector.broadcast %55 : vector<1x128xf32> to vector<16x128xf32>
      %57 = arith.addf %54, %56 : vector<16x128xf32>
      %cst_26 = arith.constant 0.000000e+00 : f32
      %58 = vector.broadcast %cst_26 : f32 to vector<16x128xf32>
      %59 = arith.maximumf %57, %58 : vector<16x128xf32>
      %c0_27 = arith.constant 0 : index
      %c0_28 = arith.constant 0 : index
      %60 = vector.load %arg11[%c0_27, %c0_28] : memref<16x384xf32, #tpu.memory_space<vmem>>, vector<16x128xf32>
      tpu.vector_store %arg11[%c0_27, %c0_28], %59 {strides = array<i32>} : memref<16x384xf32, #tpu.memory_space<vmem>>, vector<16x128xf32>,
      %c0_29 = arith.constant 0 : index
      %c128 = arith.constant 128 : index
      %61 = vector.load %arg13[%c0_29, %c128] : memref<16x384xf32, #tpu.memory_space<vmem>>, vector<16x128xf32>
      %62 = arith.index_cast %1 : i32 to index
      %c128_30 = arith.constant 128 : index
      %63 = vector.load %arg13[%62, %c128_30] : memref<16x384xf32, #tpu.memory_space<vmem>>, vector<16x128xf32>
      %c1 = arith.constant 1 : index
      %c0_31 = arith.constant 0 : index
      %64 = vector.load %arg9[%c1, %c0_31] : memref<8x128xf32, #tpu.memory_space<vmem>>, vector<1x128xf32>
      %65 = vector.broadcast %64 : vector<1x128xf32> to vector<16x128xf32>
      %66 = arith.mulf %63, %65 : vector<16x128xf32>
      %cst_32 = arith.constant dense<0.000000e+00> : vector<16xf32>
      %67 = vector.multi_reduction <add>, %66, %cst_32 [1] : vector<16x128xf32> to vector<16xf32>
      %68 = vector.shape_cast %67 : vector<16xf32> to vector<16x1xf32>
      %c1_33 = arith.constant 1 : index
      %c0_34 = arith.constant 0 : index
      %69 = vector.load %arg14[%c1_33, %c0_34] : memref<8x16xf32, #tpu.memory_space<vmem>>, vector<1x16xf32>
      %70 = vector.broadcast %68 : vector<16x1xf32> to vector<16x16xf32>
      %71 = vector.broadcast %69 : vector<1x16xf32> to vector<16x16xf32>
      %72 = arith.addf %70, %71 : vector<16x16xf32>
      %cst_35 = arith.constant 0.000000e+00 : f32
      %73 = vector.broadcast %cst_35 : f32 to vector<16x16xf32>
      %74 = arith.cmpf ogt, %72, %73 : vector<16x16xf32>
      %cst_36 = arith.constant 2.000000e-01 : f32
      %75 = vector.broadcast %cst_36 : f32 to vector<16x16xf32>
      %76 = arith.mulf %75, %72 : vector<16x16xf32>
      %77 = arith.select %74, %72, %76 : vector<16x16xi1>, vector<16x16xf32>
      %78 = arith.addf %77, %23 : vector<16x16xf32>
      %cst_37 = arith.constant dense<0xFF800000> : vector<16xf32>
      %79 = vector.multi_reduction <maximumf>, %78, %cst_37 [1] : vector<16x16xf32> to vector<16xf32>
      %80 = vector.shape_cast %79 : vector<16xf32> to vector<16x1xf32>
      %81 = vector.broadcast %80 : vector<16x1xf32> to vector<16x16xf32>
      %82 = arith.subf %78, %81 : vector<16x16xf32>
      %83 = math.exp %82 : vector<16x16xf32>
      %cst_38 = arith.constant dense<0.000000e+00> : vector<16xf32>
      %84 = vector.multi_reduction <add>, %83, %cst_38 [1] : vector<16x16xf32> to vector<16xf32>
      %85 = vector.shape_cast %84 : vector<16xf32> to vector<16x1xf32>
      %86 = tpu.reciprocal %85 {approx = true} : vector<16x1xf32> -> vector<16x1xf32>
      %87 = arith.truncf %83 : vector<16x16xf32> to vector<16x16xbf16>
      %88 = arith.truncf %61 : vector<16x128xf32> to vector<16x128xbf16>
      %cst_39 = arith.constant dense<0.000000e+00> : vector<16x128xf32>
      %89 = tpu.matmul %87, %88, %cst_39 {dimension_numbers = #tpu.dot_dimension_numbers<[1], [0], [0], [1], [0, 0, 1, 1], [], []>} : vector<16x16xbf16>, vector<16x128xbf16>, vector<16x128xf32> -> vector<16x128xf32>
      %90 = vector.broadcast %86 : vector<16x1xf32> to vector<16x128xf32>
      %91 = arith.mulf %89, %90 : vector<16x128xf32>
      %c0_40 = arith.constant 0 : index
      %c128_41 = arith.constant 128 : index
      %92 = vector.load %arg10[%c0_40, %c128_41] : memref<1x384xf32, #tpu.memory_space<vmem>>, vector<1x128xf32>
      %93 = vector.broadcast %92 : vector<1x128xf32> to vector<16x128xf32>
      %94 = arith.addf %91, %93 : vector<16x128xf32>
      %cst_42 = arith.constant 0.000000e+00 : f32
      %95 = vector.broadcast %cst_42 : f32 to vector<16x128xf32>
      %96 = arith.maximumf %94, %95 : vector<16x128xf32>
      %c0_43 = arith.constant 0 : index
      %c128_44 = arith.constant 128 : index
      %97 = vector.load %arg11[%c0_43, %c128_44] : memref<16x384xf32, #tpu.memory_space<vmem>>, vector<16x128xf32>
      tpu.vector_store %arg11[%c0_43, %c128_44], %96 {strides = array<i32>} : memref<16x384xf32, #tpu.memory_space<vmem>>, vector<16x128xf32>,
      %c0_45 = arith.constant 0 : index
      %c256 = arith.constant 256 : index
      %98 = vector.load %arg13[%c0_45, %c256] : memref<16x384xf32, #tpu.memory_space<vmem>>, vector<16x128xf32>
      %99 = arith.index_cast %1 : i32 to index
      %c256_46 = arith.constant 256 : index
      %100 = vector.load %arg13[%99, %c256_46] : memref<16x384xf32, #tpu.memory_space<vmem>>, vector<16x128xf32>
      %c2 = arith.constant 2 : index
      %c0_47 = arith.constant 0 : index
      %101 = vector.load %arg9[%c2, %c0_47] : memref<8x128xf32, #tpu.memory_space<vmem>>, vector<1x128xf32>
      %102 = vector.broadcast %101 : vector<1x128xf32> to vector<16x128xf32>
      %103 = arith.mulf %100, %102 : vector<16x128xf32>
      %cst_48 = arith.constant dense<0.000000e+00> : vector<16xf32>
      %104 = vector.multi_reduction <add>, %103, %cst_48 [1] : vector<16x128xf32> to vector<16xf32>
      %105 = vector.shape_cast %104 : vector<16xf32> to vector<16x1xf32>
      %c2_49 = arith.constant 2 : index
      %c0_50 = arith.constant 0 : index
      %106 = vector.load %arg14[%c2_49, %c0_50] : memref<8x16xf32, #tpu.memory_space<vmem>>, vector<1x16xf32>
      %107 = vector.broadcast %105 : vector<16x1xf32> to vector<16x16xf32>
      %108 = vector.broadcast %106 : vector<1x16xf32> to vector<16x16xf32>
      %109 = arith.addf %107, %108 : vector<16x16xf32>
      %cst_51 = arith.constant 0.000000e+00 : f32
      %110 = vector.broadcast %cst_51 : f32 to vector<16x16xf32>
      %111 = arith.cmpf ogt, %109, %110 : vector<16x16xf32>
      %cst_52 = arith.constant 2.000000e-01 : f32
      %112 = vector.broadcast %cst_52 : f32 to vector<16x16xf32>
      %113 = arith.mulf %112, %109 : vector<16x16xf32>
      %114 = arith.select %111, %109, %113 : vector<16x16xi1>, vector<16x16xf32>
      %115 = arith.addf %114, %23 : vector<16x16xf32>
      %cst_53 = arith.constant dense<0xFF800000> : vector<16xf32>
      %116 = vector.multi_reduction <maximumf>, %115, %cst_53 [1] : vector<16x16xf32> to vector<16xf32>
      %117 = vector.shape_cast %116 : vector<16xf32> to vector<16x1xf32>
      %118 = vector.broadcast %117 : vector<16x1xf32> to vector<16x16xf32>
      %119 = arith.subf %115, %118 : vector<16x16xf32>
      %120 = math.exp %119 : vector<16x16xf32>
      %cst_54 = arith.constant dense<0.000000e+00> : vector<16xf32>
      %121 = vector.multi_reduction <add>, %120, %cst_54 [1] : vector<16x16xf32> to vector<16xf32>
      %122 = vector.shape_cast %121 : vector<16xf32> to vector<16x1xf32>
      %123 = tpu.reciprocal %122 {approx = true} : vector<16x1xf32> -> vector<16x1xf32>
      %124 = arith.truncf %120 : vector<16x16xf32> to vector<16x16xbf16>
      %125 = arith.truncf %98 : vector<16x128xf32> to vector<16x128xbf16>
      %cst_55 = arith.constant dense<0.000000e+00> : vector<16x128xf32>
      %126 = tpu.matmul %124, %125, %cst_55 {dimension_numbers = #tpu.dot_dimension_numbers<[1], [0], [0], [1], [0, 0, 1, 1], [], []>} : vector<16x16xbf16>, vector<16x128xbf16>, vector<16x128xf32> -> vector<16x128xf32>
      %127 = vector.broadcast %123 : vector<16x1xf32> to vector<16x128xf32>
      %128 = arith.mulf %126, %127 : vector<16x128xf32>
      %c0_56 = arith.constant 0 : index
      %c256_57 = arith.constant 256 : index
      %129 = vector.load %arg10[%c0_56, %c256_57] : memref<1x384xf32, #tpu.memory_space<vmem>>, vector<1x128xf32>
      %130 = vector.broadcast %129 : vector<1x128xf32> to vector<16x128xf32>
      %131 = arith.addf %128, %130 : vector<16x128xf32>
      %cst_58 = arith.constant 0.000000e+00 : f32
      %132 = vector.broadcast %cst_58 : f32 to vector<16x128xf32>
      %133 = arith.maximumf %131, %132 : vector<16x128xf32>
      %c0_59 = arith.constant 0 : index
      %c256_60 = arith.constant 256 : index
      %134 = vector.load %arg11[%c0_59, %c256_60] : memref<16x384xf32, #tpu.memory_space<vmem>>, vector<16x128xf32>
      tpu.vector_store %arg11[%c0_59, %c256_60], %133 {strides = array<i32>} : memref<16x384xf32, #tpu.memory_space<vmem>>, vector<16x128xf32>,
    } else {
    }
    return
  }
  func.func @transform_0(%arg0: i32, %arg1: i32) -> (i32, i32) {
    %c0_i32 = arith.constant 0 : i32
    %c0_i32_0 = arith.constant 0 : i32
    return %arg1, %c0_i32 : i32, i32
  }
  func.func @transform_1(%arg0: i32, %arg1: i32) -> (i32, i32) {
    %c0_i32 = arith.constant 0 : i32
    %c0_i32_0 = arith.constant 0 : i32
    %c0_i32_1 = arith.constant 0 : i32
    return %c0_i32, %c0_i32_0 : i32, i32
  }
  func.func @transform_2(%arg0: i32, %arg1: i32) -> (i32, i32) {
    %c0_i32 = arith.constant 0 : i32
    %c0_i32_0 = arith.constant 0 : i32
    %c0_i32_1 = arith.constant 0 : i32
    return %c0_i32, %c0_i32_0 : i32, i32
  }
  func.func @transform_3(%arg0: i32, %arg1: i32) -> (i32, i32) {
    %c0_i32 = arith.constant 0 : i32
    %c0_i32_0 = arith.constant 0 : i32
    %c0_i32_1 = arith.constant 0 : i32
    return %c0_i32, %c0_i32_0 : i32, i32
  }
  func.func @transform_4(%arg0: i32, %arg1: i32) -> (i32, i32) {
    %c0_i32 = arith.constant 0 : i32
    %c0_i32_0 = arith.constant 0 : i32
    %c0_i32_1 = arith.constant 0 : i32
    return %c0_i32, %c0_i32_0 : i32, i32
  }
  func.func @transform_5(%arg0: i32, %arg1: i32) -> (i32, i32) {
    %c0_i32 = arith.constant 0 : i32
    %c0_i32_0 = arith.constant 0 : i32
    %c0_i32_1 = arith.constant 0 : i32
    return %c0_i32, %c0_i32_0 : i32, i32
  }
  func.func @transform_6(%arg0: i32, %arg1: i32) -> (i32, i32) {
    %c0_i32 = arith.constant 0 : i32
    %c0_i32_0 = arith.constant 0 : i32
    %c0_i32_1 = arith.constant 0 : i32
    return %c0_i32, %c0_i32_0 : i32, i32
  }
  func.func @transform_7(%arg0: i32, %arg1: i32) -> (i32, i32) {
    %c0_i32 = arith.constant 0 : i32
    %c0_i32_0 = arith.constant 0 : i32
    %c0_i32_1 = arith.constant 0 : i32
    return %c0_i32, %c0_i32_0 : i32, i32
  }
  func.func @transform_8(%arg0: i32, %arg1: i32) -> (i32, i32) {
    %c0_i32 = arith.constant 0 : i32
    %c0_i32_0 = arith.constant 0 : i32
    %c0_i32_1 = arith.constant 0 : i32
    return %c0_i32, %c0_i32_0 : i32, i32
  }
  func.func @transform_9(%arg0: i32, %arg1: i32) -> (i32, i32) {
    %0 = arith.muli %arg1, %arg0 : i32
    %c0_i32 = arith.constant 0 : i32
    %c0_i32_0 = arith.constant 0 : i32
    return %0, %c0_i32 : i32, i32
  }
}

</mosaic_0001>

<bundles_post_ra>
// kernel: tpu_custom_call.1
= control target key start
LH: loop header
LB: loop body
LE: loop exit
PB: predicated region body
PF: predicated region fallthrough
CT: control target
= control target key end

     0   :  { %14 = vsyncpa [#allocation6], 0  ;;  %s1788_s0 = inlined_call_operand.hbm [shape: bf16[16,16], index: 0, kind: input, shape index: {}]   ;;  %s1789_s1 = inlined_call_operand.vmem [shape: f32[16,1], index: 1, kind: input, shape index: {}]   ;;  %s1790_s2 = inlined_call_operand.vmem [shape: f32[16,128], index: 2, kind: input, shape index: {}]   ;;  %s1791_s3 = inlined_call_operand.hbm [shape: f32[128,128], index: 3, kind: input, shape index: {}]   ;;  %s1792_s4 = inlined_call_operand.vmem [shape: f32[1,128], index: 4, kind: input, shape index: {}]   ;;  %s1793_s5 = inlined_call_operand.hbm [shape: f32[128,384], index: 5, kind: input, shape index: {}]   ;;  %s1794_s6 = inlined_call_operand.hbm [shape: f32[8,384], index: 6, kind: input, shape index: {}]   ;;  %s1795_s7 = inlined_call_operand.hbm [shape: f32[8,128], index: 7, kind: input, shape index: {}]   ;;  %s1796_s8 = inlined_call_operand.vmem [shape: f32[1,384], index: 8, kind: input, shape index: {}]   ;;  %s1797_s9 = inlined_call_operand.hbm [shape: f32[16,384], index: 9, kind: output, shape index: {}]  }
   0x1   :  { %15 = vsyncpa [#allocation9], 0 }
   0x2   :  { %16 = vsyncpa [#allocation12], 0 }
   0x3   :  { %17 = vsyncpa [#allocation7], 0 }
   0x4   :  { %19 = vsyncpa [#allocation7 + $0x1], 0  ;;  %s1619_s30 = smov 0   ;;  %s1621_s10 = smov 0  }
   0x5   :  { %s1623_s11 = smov 0  }
   0x6 LB: > { %s298_s14 = sshll.u32 %s1791_s3, 4  ;;  %s1798_s15 = sadd.s32 4294967295, %s1550_s11   ;;  %s1550_s11 = sphi %s1623_s11, %s25_s11   ;;  %s1546_s10 = sphi %s1621_s10, %s1805_s10   ;;  %s1542_s30 = sphi %s1619_s30, %s1804_s30   ;;  %s299_s14 = int_to_ptr.hbm [resolvable:$true] %s298_s14 }
   0x7   : > { %p1123_p0 = scmp.ge.s32.totalorder %s1550_s11, 1  ;;  %p264_p1 = scmp.lt.s32.totalorder %s1550_s11, 3 }
   0x8   : > { %p1643_p2 = scmp.eq.s32.totalorder %s1798_s15, 0  ;;  %s1552_s19 = smov [#allocation8]  }
   0x9   : > { %p1647_p3 = pnand %p1123_p0, %p264_p1  ;;  %s300_s20 = sshll.u32 %s1552_s19, 4  ;;  %s301_s20 = int_to_ptr.vmem [resolvable:$true] %s300_s20 }
   0xa   : > { %s330_s23 = sshll.u32 %s1794_s6, 4  ;;  %s1553_s25 = smov [#allocation11]   ;;  %s331_s23 = int_to_ptr.hbm [resolvable:$true] %s330_s23 }
   0xb   : > { %p1224_p4 = pneg %p1647_p3  ;;  %s332_s26 = sshll.u32 %s1553_s25, 4  ;;  %s333_s26 = int_to_ptr.vmem [resolvable:$true] %s332_s26 }
   0xc   : > { %s1554_s27 = smov 128   ;;  %s1555_s28 = smov 8  }
   0xd   : > { %p1658_p5 = pnand %p1643_p2, %p1224_p4  ;;  %s37_s29 = sadd.s32 1, %s1546_s10 }
   0xe   : > { %s278_s19 = sshll.u32 %s1788_s0, 4  ;;  %p39_p6 = scmp.ge.s32.totalorder %s37_s29, 2  ;;  %s279_s19 = int_to_ptr.hbm [resolvable:$true] %s278_s19 }
   0xf   : > { %1230 = dma.hbm_to_vmem [thread:$0]  (!%p1658_p5), %s299_s14, 2048, %s301_s20, [#allocation9], %s1554_s27, %s1554_s27, %s1555_s28  }
  0x10   : > { %1236 = dma.hbm_to_vmem [thread:$0]  (!%p1658_p5), %s331_s23, 384, %s333_s26, [#allocation12]  }
  0x11   : > { %s1807_s29 = smov (%p39_p6, %s37_s29), 0  ;;  %s1556_s21 = smov [#allocation5]  }
  0x12   : > { %s280_s22 = sshll.u32 %s1556_s21, 4  ;;  %s315_s14 = sshll.u32 %s1793_s5, 4  ;;  %s281_s22 = int_to_ptr.vmem [resolvable:$true] %s280_s22  ;;  %s316_s14 = int_to_ptr.hbm [resolvable:$true] %s315_s14 }
  0x13   : > { %s1557_s20 = smov 64   ;;  %s1558_s23 = smov 4  }
  0x14   : > { %1227 = dma.hbm_to_vmem [thread:$0]  (!%p1658_p5), %s279_s19, 128, %s281_s22, [#allocation6], %s1557_s20, %s1557_s20, %s1558_s23  }
  0x15   : > { %s1559_s26 = smov [#allocation10]   ;;  %s1560_s28 = smov 384  }
  0x16   : > { %s317_s27 = sshll.u32 %s1559_s26, 4  ;;  %s1561_s12 = smov 24   ;;  %s318_s27 = int_to_ptr.vmem [resolvable:$true] %s317_s27 }
  0x17   : > { %1233 = dma.hbm_to_vmem [thread:$0]  (!%p1658_p5), %s316_s14, 6144, %s318_s27, [#allocation9], %s1560_s28, %s1560_s28, %s1561_s12  }
  0x18   : > { %s342_s15 = sshll.u32 %s1795_s7, 4  ;;  %s1562_s16 = smov [#allocation13]   ;;  %s343_s15 = int_to_ptr.hbm [resolvable:$true] %s342_s15 }
  0x19   : > { %s344_s25 = sshll.u32 %s1562_s16, 4  ;;  %360 = sbr.rel (%p1647_p3) target bundleno = 1058 (0x422), region = 56  ;;  %s345_s25 = int_to_ptr.vmem [resolvable:$true] %s344_s25 }
  0x1a   : > { %1239 = dma.hbm_to_vmem [thread:$0]  (!%p1658_p5), %s343_s15, 128, %s345_s25, [#allocation12]  }
  0x1e   : > { %1525 = dma.done.wait (%p1643_p2), [#allocation6], 128  }
  0x1f   : > { %1527 = vsyncadd (%p1643_p2), [#allocation6], 4294967168 }
  0x20   : > { %1529 = dma.done.wait (%p1643_p2), [#allocation9], 8192  }
  0x21   : > { %1531 = vsyncadd (%p1643_p2), [#allocation9], 4294959104 }
  0x22   : > { %1533 = dma.done.wait (%p1643_p2), [#allocation12], 512  }
  0x23   : > { %1535 = vsyncadd (%p1643_p2), [#allocation12], 4294966784  ;;  %p417_p7 = scmp.eq.s32.totalorder %s1542_s30, 0 }
  0x24   : > { %v440_v0 = vld [vmem:[#allocation8 + $0x78] sm:$0xff] (%p417_p7)  ;;  %v439_v1 = vld [vmem:[#allocation8 + $0x70] sm:$0xff] (%p417_p7)  ;;  %v438_v2 = vld [vmem:[#allocation8 + $0x68] sm:$0xff] (%p417_p7)  ;;  %v1563_v3 = vmov (%p417_p7), 0  }
  0x25   : > { %422 = sbr.rel (!%p417_p7) target bundleno = 199 (0xc7), region = 80  ;;  %441 = vmatpush.msra.mxu0 (%p417_p7), %v440_v0  ;;  %1168 = vmatpush.msra.mxu1 (%p417_p7), %v440_v0  ;;  %v437_v4 = vld [vmem:[#allocation8 + $0x60] sm:$0xff] (%p417_p7)  ;;  %v464_v5 = vld [vmem:[%s1789_s1] sm:$0xff] (%p417_p7)  ;;  %v435_v7 = vld [vmem:[#allocation8 + $0x50] sm:$0xff] (%p417_p7) }
  0x26   : > { %1298 = vset.pattern.permute.xlu0 (%p417_p7), %v1563_v3  ;;  %v436_v6 = vld [vmem:[#allocation8 + $0x58] sm:$0xff] (%p417_p7)  ;;  %v434_v8 = vld [vmem:[#allocation8 + $0x48] sm:$0xff] (%p417_p7)  ;;  %v465_v9 = vld [vmem:[%s1789_s1 + $0x8] sm:$0xff] (%p417_p7) }
  0x27   : > { %442 = vmatpush.msra.mxu0 (%p417_p7), %v439_v1  ;;  %1169 = vmatpush.msra.mxu1 (%p417_p7), %v439_v1  ;;  %v433_v10 = vld [vmem:[#allocation8 + $0x40] sm:$0xff] (%p417_p7)  ;;  %v432_v11 = vld [vmem:[#allocation8 + $0x38] sm:$0xff] (%p417_p7)  ;;  %v431_v12 = vld [vmem:[#allocation8 + $0x30] sm:$0xff] (%p417_p7) }
  0x28   : > { %468 = vperm.xlu0 (%p417_p7), %1298, %v464_v5   ;;  %v430_v13 = vld [vmem:[#allocation8 + $0x28] sm:$0xff] (%p417_p7)  ;;  %v429_v14 = vld [vmem:[#allocation8 + $0x20] sm:$0xff] (%p417_p7)  ;;  %v428_v15 = vld [vmem:[#allocation8 + $0x18] sm:$0xff] (%p417_p7) }
  0x29   : > { %443 = vmatpush.msra.mxu0 (%p417_p7), %v438_v2  ;;  %1170 = vmatpush.msra.mxu1 (%p417_p7), %v438_v2  ;;  %v427_v16 = vld [vmem:[#allocation8 + $0x10] sm:$0xff] (%p417_p7)  ;;  %v426_v17 = vld [vmem:[#allocation8 + $0x8] sm:$0xff] (%p417_p7)  ;;  %v425_v18 = vld [vmem:[#allocation8] sm:$0xff] (%p417_p7) }
  0x2a   : > { %v423_v19 = vld [vmem:[%s1790_s2] sm:$0xff]  ;;  %v424_v20 = vld [vmem:[%s1790_s2 + $0x8] sm:$0xff] }
  0x2b   : > { %444 = vmatpush.msra.mxu0 %v437_v4  ;;  %1171 = vmatpush.msra.mxu1 %v437_v4 }
  0x2d   : > { %445 = vmatpush.msra.mxu0 %v436_v6  ;;  %1172 = vmatpush.msra.mxu1 %v436_v6 }
  0x2f   : > { %446 = vmatpush.msra.mxu0 %v435_v7  ;;  %1173 = vmatpush.msra.mxu1 %v435_v7 }
  0x30   : > { %473 = vperm.xlu0 %1298, %v465_v9  }
  0x31   : > { %447 = vmatpush.msra.mxu0 %v434_v8  ;;  %1174 = vmatpush.msra.mxu1 %v434_v8 }
  0x33   : > { %448 = vmatpush.msra.mxu0 %v433_v10  ;;  %1175 = vmatpush.msra.mxu1 %v433_v10 }
  0x35   : > { %449 = vmatpush.msra.mxu0 %v432_v11  ;;  %1176 = vmatpush.msra.mxu1 %v432_v11 }
  0x37   : > { %450 = vmatpush.msra.mxu0 %v431_v12  ;;  %1177 = vmatpush.msra.mxu1 %v431_v12 }
  0x39   : > { %451 = vmatpush.msra.mxu0 %v430_v13  ;;  %1178 = vmatpush.msra.mxu1 %v430_v13 }
  0x3b   : > { %452 = vmatpush.msra.mxu0 %v429_v14  ;;  %1179 = vmatpush.msra.mxu1 %v429_v14 }
  0x3d   : > { %453 = vmatpush.msra.mxu0 %v428_v15  ;;  %1180 = vmatpush.msra.mxu1 %v428_v15 }
  0x3f   : > { %454 = vmatpush.msra.mxu0 %v427_v16  ;;  %1181 = vmatpush.msra.mxu1 %v427_v16 }
  0x41   : > { %455 = vmatpush.msra.mxu0 %v426_v17  ;;  %1182 = vmatpush.msra.mxu1 %v426_v17 }
  0x43   : > { %456 = vmatpush.msra.mxu0 %v425_v18  ;;  %1183 = vmatpush.msra.mxu1 %v425_v18 }
  0x44   : > { %457 = vmatmul.f32.vlgmr.msra.gmra.mxu0 %v423_v19  ;;  %460 = vmatmul.f32.vlgmr.msra.gmra.mxu1 %v424_v20 }
  0x9a   : > { %v469_v21 = vpop.permute.xlu0 %468 }
  0xa2   : > { %v474_v22 = vpop.permute.xlu0 %473 }
  0xc1   : > { %v458_v23 = vpop.f32.mrf.mxu0  ;;  %v461_v24 = vpop.f32.mrf.mxu1 }
  0xc2   : > { %v476_v25 = vmul.f32 %v469_v21, %v458_v23  ;;  %v477_v26 = vmul.f32 %v474_v22, %v461_v24 }
  0xc4   : > { %v1162_v27 = vpack.c.bf16 %v477_v26, %v476_v25 }
  0xc6   : > { %1163 = vst [vmem:[#allocation2] sm:$0xff] %v1162_v27  }
  0xc7 PF: > { %p1136_p8 = scmp.ne.s32.totalorder %s1542_s30, 0 }
  0xc9   : > { %484 = sbr.rel (%p1136_p8) target bundleno = 484 (0x1e4), region = 84 }
  0xce   : > { %v1157_v28 = vld [vmem:[#allocation2] sm:$0xff]  ;;  %v1564_v31 = vmov 0   ;;  %v586_v32 = vld [vmem:[#allocation10 + $0x168] sm:$0xff]  ;;  %v587_v33 = vld [vmem:[#allocation10 + $0x170] sm:$0xff]  ;;  %vm500_vm0 = vcmask 130048  }
  0xcf   : > { %v519_v29 = vld [vmem:[%s1789_s1] sm:$0xff]  ;;  %1299 = vset.pattern.permute.xlu0 %v1564_v31  ;;  %511 = vmatpush.bf16.msra.mxu0 %v1157_v28  ;;  %v583_v36 = vld [vmem:[#allocation10 + $0x150] sm:$0xff]  ;;  %v585_v37 = vld [vmem:[#allocation10 + $0x160] sm:$0xff] }
  0xd0   : > { %v1156_v30 = vld [vmem:[#allocation5] sm:$0xff]  ;;  %523 = vperm.xlu0 %1299, %v519_v29   ;;  %612 = vmatpush.msra.mxu2 %v587_v33  ;;  %v581_v38 = vld [vmem:[#allocation10 + $0x140] sm:$0xff]  ;;  %v582_v40 = vld [vmem:[#allocation10 + $0x148] sm:$0xff] }
  0xd1   : > { %v588_v34 = vld [vmem:[#allocation10 + $0x178] sm:$0xff]  ;;  %1184 = vmatpush.msra.mxu1 %v586_v32  ;;  %v578_v41 = vld [vmem:[#allocation10 + $0x128] sm:$0xff]  ;;  %v520_v42 = vld [vmem:[%s1789_s1 + $0x8] sm:$0xff] }
  0xd2   : > { %v584_v35 = vld [vmem:[#allocation10 + $0x158] sm:$0xff]  ;;  %635 = vmatpush.msra.mxu3 %v588_v34  ;;  %1145 = vmatmul.msk.bf16.vlgmr.msra.gmra.mxu0 %vm500_vm0, %v1156_v30  ;;  %v577_v43 = vld [vmem:[#allocation10 + $0x120] sm:$0xff]  ;;  %v579_v44 = vld [vmem:[#allocation10 + $0x130] sm:$0xff] }
  0xd3   : > { %589 = vmatpush.msrb.mxu0 %v586_v32  ;;  %613 = vmatpush.msra.mxu2 %v584_v35  ;;  %v580_v39 = vld [vmem:[#allocation10 + $0x138] sm:$0xff]  ;;  %v575_v45 = vld [vmem:[#allocation10 + $0x110] sm:$0xff]  ;;  %v574_v46 = vld [vmem:[#allocation10 + $0x108] sm:$0xff] }
  0xd4   : > { %636 = vmatpush.msra.mxu3 %v585_v37  ;;  %1185 = vmatpush.msra.mxu1 %v583_v36  ;;  %v576_v47 = vld [vmem:[#allocation10 + $0x118] sm:$0xff]  ;;  %v571_v49 = vld [vmem:[#allocation10 + $0xf0] sm:$0xff]  ;;  %v573_v50 = vld [vmem:[#allocation10 + $0x100] sm:$0xff] }
  0xd5   : > { %590 = vmatpush.msrb.mxu0 %v583_v36  ;;  %614 = vmatpush.msra.mxu2 %v581_v38  ;;  %v572_v48 = vld [vmem:[#allocation10 + $0xf8] sm:$0xff]  ;;  %v569_v51 = vld [vmem:[#allocation10 + $0xe0] sm:$0xff]  ;;  %v570_v53 = vld [vmem:[#allocation10 + $0xe8] sm:$0xff] }
  0xd6   : > { %637 = vmatpush.msra.mxu3 %v582_v40  ;;  %1186 = vmatpush.msra.mxu1 %v580_v39  ;;  %v568_v52 = vld [vmem:[#allocation10 + $0xd8] sm:$0xff]  ;;  %v566_v54 = vld [vmem:[#allocation10 + $0xc8] sm:$0xff]  ;;  %v565_v55 = vld [vmem:[#allocation10 + $0xc0] sm:$0xff] }
  0xd7   : > { %591 = vmatpush.msrb.mxu0 %v580_v39  ;;  %615 = vmatpush.msra.mxu2 %v578_v41  ;;  %v567_v56 = vld [vmem:[#allocation10 + $0xd0] sm:$0xff]  ;;  %v564_v58 = vld [vmem:[#allocation10 + $0xb8] sm:$0xff]  ;;  %v562_v59 = vld [vmem:[#allocation10 + $0xa8] sm:$0xff] }
  0xd8   : > { %528 = vperm.xlu0 %1299, %v520_v42   ;;  %638 = vmatpush.msra.mxu3 %v579_v44  ;;  %v563_v57 = vld [vmem:[#allocation10 + $0xb0] sm:$0xff]  ;;  %v560_v61 = vld [vmem:[#allocation10 + $0x98] sm:$0xff]  ;;  %v561_v62 = vld [vmem:[#allocation10 + $0xa0] sm:$0xff] }
  0xd9   : > { %592 = vmatpush.msrb.mxu0 %v577_v43  ;;  %616 = vmatpush.msra.mxu2 %v575_v45  ;;  %v559_v60 = vld [vmem:[#allocation10 + $0x90] sm:$0xff]  ;;  %v557_v63 = vld [vmem:[#allocation10 + $0x80] sm:$0xff]  ;;  %v556_v0 = vld [vmem:[#allocation10 + $0x78] sm:$0xff] }
  0xda   : > { %1187 = vmatpush.msra.mxu1 %v577_v43  ;;  %639 = vmatpush.msra.mxu3 %v576_v47  ;;  %v558_v1 = vld [vmem:[#allocation10 + $0x88] sm:$0xff]  ;;  %v555_v3 = vld [vmem:[#allocation10 + $0x70] sm:$0xff]  ;;  %v553_v4 = vld [vmem:[#allocation10 + $0x60] sm:$0xff] }
  0xdb   : > { %593 = vmatpush.msrb.mxu0 %v574_v46  ;;  %617 = vmatpush.msra.mxu2 %v572_v48  ;;  %v554_v2 = vld [vmem:[#allocation10 + $0x68] sm:$0xff]  ;;  %v551_v5 = vld [vmem:[#allocation10 + $0x50] sm:$0xff]  ;;  %v552_v6 = vld [vmem:[#allocation10 + $0x58] sm:$0xff] }
  0xdc   : > { %1188 = vmatpush.msra.mxu1 %v574_v46  ;;  %640 = vmatpush.msra.mxu3 %v573_v50  ;;  %v550_v7 = vld [vmem:[#allocation10 + $0x48] sm:$0xff]  ;;  %v547_v8 = vld [vmem:[#allocation10 + $0x30] sm:$0xff]  ;;  %v548_v9 = vld [vmem:[#allocation10 + $0x38] sm:$0xff] }
  0xdd   : > { %594 = vmatpush.msrb.mxu0 %v571_v49  ;;  %618 = vmatpush.msra.mxu2 %v569_v51  ;;  %v549_v10 = vld [vmem:[#allocation10 + $0x40] sm:$0xff]  ;;  %v544_v11 = vld [vmem:[#allocation10 + $0x18] sm:$0xff]  ;;  %v546_v13 = vld [vmem:[#allocation10 + $0x28] sm:$0xff] }
  0xde   : > { %1189 = vmatpush.msra.mxu1 %v571_v49  ;;  %641 = vmatpush.msra.mxu3 %v570_v53  ;;  %v545_v12 = vld [vmem:[#allocation10 + $0x20] sm:$0xff]  ;;  %v542_v15 = vld [vmem:[#allocation10 + $0x8] sm:$0xff]  ;;  %v543_v16 = vld [vmem:[#allocation10 + $0x10] sm:$0xff] }
  0xdf   : > { %595 = vmatpush.msrb.mxu0 %v568_v52  ;;  %619 = vmatpush.msra.mxu2 %v566_v54  ;;  %v541_v14 = vld [vmem:[#allocation10] sm:$0xff]  ;;  %v1300_v18 = vld [vmem:[%s1792_s4] ss:$0 sm:$0xff] }
  0xe0   : > { %1190 = vmatpush.msra.mxu1 %v568_v52  ;;  %642 = vmatpush.msra.mxu3 %v567_v56 }
  0xe1   : > { %596 = vmatpush.msrb.mxu0 %v565_v55  ;;  %620 = vmatpush.msra.mxu2 %v563_v57 }
  0xe2   : > { %1191 = vmatpush.msra.mxu1 %v565_v55  ;;  %643 = vmatpush.msra.mxu3 %v564_v58 }
  0xe3   : > { %597 = vmatpush.msrb.mxu0 %v562_v59  ;;  %621 = vmatpush.msra.mxu2 %v560_v61 }
  0xe4   : > { %644 = vmatpush.msra.mxu3 %v561_v62  ;;  %1192 = vmatpush.msra.mxu1 %v562_v59 }
  0xe5   : > { %598 = vmatpush.msrb.mxu0 %v559_v60  ;;  %622 = vmatpush.msra.mxu2 %v557_v63 }
  0xe6   : > { %645 = vmatpush.msra.mxu3 %v558_v1  ;;  %1193 = vmatpush.msra.mxu1 %v559_v60 }
  0xe7   : > { %599 = vmatpush.msrb.mxu0 %v556_v0  ;;  %623 = vmatpush.msra.mxu2 %v554_v2 }
  0xe8   : > { %646 = vmatpush.msra.mxu3 %v555_v3  ;;  %1194 = vmatpush.msra.mxu1 %v556_v0 }
  0xe9   : > { %600 = vmatpush.msrb.mxu0 %v553_v4  ;;  %624 = vmatpush.msra.mxu2 %v551_v5 }
  0xea   : > { %647 = vmatpush.msra.mxu3 %v552_v6  ;;  %1195 = vmatpush.msra.mxu1 %v553_v4 }
  0xeb   : > { %601 = vmatpush.msrb.mxu0 %v550_v7  ;;  %625 = vmatpush.msra.mxu2 %v548_v9 }
  0xec   : > { %1196 = vmatpush.msra.mxu1 %v550_v7  ;;  %648 = vmatpush.msra.mxu3 %v549_v10 }
  0xed   : > { %602 = vmatpush.msrb.mxu0 %v547_v8  ;;  %626 = vmatpush.msra.mxu2 %v545_v12 }
  0xee   : > { %1197 = vmatpush.msra.mxu1 %v547_v8  ;;  %649 = vmatpush.msra.mxu3 %v546_v13 }
  0xef   : > { %603 = vmatpush.msrb.mxu0 %v544_v11  ;;  %627 = vmatpush.msra.mxu2 %v542_v15 }
  0xf0   : > { %1198 = vmatpush.msra.mxu1 %v544_v11  ;;  %650 = vmatpush.msra.mxu3 %v543_v16 }
  0xf1   : > { %604 = vmatpush.msrb.mxu0 %v541_v14 }
  0xf2   : > { %1199 = vmatpush.msra.mxu1 %v541_v14 }
 0x142   : > { %v524_v17 = vpop.permute.xlu0 %523 }
 0x14a   : > { %v529_v23 = vpop.permute.xlu0 %528 }
 0x14f   : > { %v513_v19 = vpop.f32.mrf.mxu0 }
 0x150   : > { %v531_v20 = vmul.f32 %v524_v17, %v513_v19 }
 0x152   : > { %v537_v21 = vadd.f32 %v1300_v18, %v531_v20 }
 0x154   : > { %v539_v22 = vmax.f32 %v537_v21, 0.0 }
 0x156   : > { %605 = vmatmul.f32.vlgmr.msrb.gmra.mxu0 %v539_v22  ;;  %628 = vmatmul.f32.vlgmr.msra.gmra.mxu2 %v539_v22 }
 0x157   : > { %651 = vmatmul.f32.vlgmr.msra.gmra.mxu3 %v539_v22  ;;  %v515_v24 = vpop.f32.mrf.mxu0 }
 0x158   : > { %v532_v25 = vmul.f32 %v529_v23, %v515_v24 }
 0x15a   : > { %v538_v26 = vadd.f32 %v1300_v18, %v532_v25 }
 0x15c   : > { %v540_v27 = vmax.f32 %v538_v26, 0.0 }
 0x15e   : > { %608 = vmatmul.f32.vlgmr.msra.gmra.mxu1 %v540_v27  ;;  %631 = vmatmul.f32.gmra.mxu2 %v540_v27 }
 0x15f   : > { %654 = vmatmul.f32.gmra.mxu3 %v540_v27 }
 0x1d3   : > { %v606_v28 = vpop.f32.mrf.mxu0 }
 0x1d4   : > { %663 = vst [vmem:[#allocation3 + $0x28] sm:$0xff] %v606_v28 }
 0x1d9   : > { %v629_v29 = vpop.f32.mrf.mxu2 }
 0x1da   : > { %664 = vst [vmem:[#allocation3 + $0x10] sm:$0xff] %v629_v29  ;;  %v652_v30 = vpop.f32.mrf.mxu3 }
 0x1db   : > { %665 = vst [vmem:[#allocation3 + $0x8] sm:$0xff] %v652_v30  ;;  %v609_v31 = vpop.f32.mrf.mxu1 }
 0x1dc   : > { %666 = vst [vmem:[#allocation3] sm:$0xff] %v609_v31 }
 0x1e1   : > { %v632_v32 = vpop.f32.mrf.mxu2 }
 0x1e2   : > { %667 = vst [vmem:[#allocation3 + $0x18] sm:$0xff] %v632_v32  ;;  %v655_v33 = vpop.f32.mrf.mxu3 }
 0x1e3   : > { %668 = vst [vmem:[#allocation3 + $0x20] sm:$0xff] %v655_v33 }
 0x1e4 PF: > { %p669_p9 = scmp.eq.s32.totalorder %s1542_s30, 1 }
 0x1e5   : > { %v680_v35 = vld [vmem:[#allocation3] sm:$0xff] (%p669_p9)  ;;  %v679_v37 = vld [vmem:[#allocation3 + $0x8] sm:$0xff] (%p669_p9)  ;;  %v678_v39 = vld [vmem:[#allocation3 + $0x10] sm:$0xff] (%p669_p9)  ;;  %vm743_vm1 = vcmask (%p669_p9), 130048  }
 0x1e6   : > { %673 = sbr.rel (!%p669_p9) target bundleno = 633 (0x279), region = 88  ;;  %697 = vmatpush.xpose.msra.mxu0 (%p669_p9), %v680_v35  ;;  %v677_v38 = vld [vmem:[#allocation3 + $0x28] sm:$0xff] (%p669_p9)  ;;  %v676_v40 = vld [vmem:[#allocation11 + $0x10] sm:$0xff] (%p669_p9)  ;;  %v674_v41 = vld [vmem:[#allocation11] sm:$0xff] (%p669_p9) }
 0x1e7   : > { %v675_v42 = vld [vmem:[#allocation11 + $0x8] sm:$0xff] (%p669_p9) }
 0x1e9   : > { %v681_v36 = vld [vmem:[#allocation3 + $0x18] sm:$0xff] (%p669_p9) }
 0x1ea   : > { %v682_v34 = vld [vmem:[#allocation3 + $0x20] sm:$0xff] (%p669_p9)  ;;  %717 = vmatpush.xpose.msra.mxu1 (%p669_p9), %v681_v36  ;;  %698 = vmatpush.xpose.msra.mxu0 (%p669_p9), %v677_v38 }
 0x1eb   : > { %737 = vmatpush.xpose.msra.mxu2 %v682_v34 }
 0x1ed   : > { %699 = vmatmul.f32.vlgmr.msra.gmra.mxu0 %v674_v41 }
 0x1ee   : > { %718 = vmatpush.xpose.msra.mxu1 %v678_v39 }
 0x1ef   : > { %738 = vmatpush.xpose.msra.mxu2 %v679_v37 }
 0x1f1   : > { %719 = vmatmul.f32.vlgmr.msra.gmra.mxu1 %v675_v42 }
 0x1f2   : > { %739 = vmatmul.f32.vlgmr.msra.gmra.mxu2 %v676_v40 }
 0x26a   : > { %v700_v43 = vpop.f32.mrf.mxu0 }
 0x26e   : > { %v720_v44 = vpop.f32.mrf.mxu1 }
 0x26f   : > { %v721_v45 = vadd.f32 %v720_v44, %v700_v43 }
 0x275   : > { %v740_v46 = vpop.f32.mrf.mxu2 }
 0x276   : > { %v741_v47 = vadd.f32 %v740_v46, %v721_v45 }
 0x278   : > { %744 = vst.msk [vmem:[#allocation4] sm:$0xff] %vm743_vm1, %v741_v47 }
 0x279 PF: > { %p1147_p10 = scmp.ne.s32.totalorder %s1542_s30, 1 }
 0x27b   : > { %747 = sbr.rel (%p1147_p10) target bundleno = 1053 (0x41d), region = 92 }
 0x280   : > { %v1723_v48 = vld [vmem:[#allocation3 + $0x8] sm:$0xff]  ;;  %v1301_v49 = vld [vmem:[#allocation13 + $0x2] ss:$0 sm:$0xff]  ;;  %v1725_v50 = vld [vmem:[#allocation3 + $0x10] sm:$0xff]  ;;  %v1565_v9 = vmov -1e+30  }
 0x281   : > { %v1302_v51 = vld [vmem:[#allocation13 + $0x1] ss:$0 sm:$0xff]  ;;  %v918_v52 = vmul.f32 %v1301_v49, %v1723_v48  ;;  %v1728_v53 = vld [vmem:[#allocation3 + $0x28] sm:$0xff]  ;;  %v1303_v54 = vld [vmem:[#allocation13] ss:$0 sm:$0xff]  ;;  %vm785_vm5 = vcmask 130048  }
 0x282   : > { %v843_v55 = vmul.f32 %v1302_v51, %v1725_v50  ;;  %v767_v56 = vmul.f32 %v1303_v54, %v1728_v53  ;;  %v1732_v57 = vld [vmem:[#allocation3 + $0x20] sm:$0xff]  ;;  %v1734_v58 = vld [vmem:[#allocation3 + $0x18] sm:$0xff]  ;;  %v1304_v1 = vld [vmem:[#allocation4 + $0x2] ss:$0 sm:$0xff] }
 0x283   : > { %920 = vadd.xlane.f32.xlu0 %v918_v52  ;;  %v1736_v59 = vld [vmem:[#allocation3] sm:$0xff]  ;;  %v919_v60 = vmul.f32 %v1301_v49, %v1732_v57  ;;  %v844_v61 = vmul.f32 %v1302_v51, %v1734_v58  ;;  %v1165_v63 = vld [vmem:[#allocation5] sm:$0xff]   ;;  %v1306_v2 = vld [vmem:[#allocation4] ss:$0 sm:$0xff]  ;;  %v957_v45 = vpack.c.bf16 %v1732_v57, %v1723_v48  ;;  %v882_v46 = vpack.c.bf16 %v1734_v58, %v1725_v50 }
 0x284   : > { %845 = vadd.xlane.f32.xlu2 %v843_v55  ;;  %769 = vadd.xlane.f32.xlu1 %v767_v56  ;;  %v768_v62 = vmul.f32 %v1303_v54, %v1736_v59  ;;  %v1166_v0 = vunpack.c.l.bf16 %v1165_v63  ;;  %v1167_v11 = vunpack.c.h.bf16 %v1165_v63  ;;  %v1305_v12 = vld [vmem:[#allocation4 + $0x1] ss:$0 sm:$0xff]  ;;  %v807_v44 = vpack.c.bf16 %v1736_v59, %v1728_v53 }
 0x285   : > { %968 = vmatpush.bf16.msra.mxu2 %v957_v45  ;;  %893 = vmatpush.bf16.msra.mxu1 %v882_v46 }
 0x286   : > { %vm752_vm2 = vcmp.gt.f32.partialorder %v1166_v0, 0.0  ;;  %vm753_vm6 = vcmp.gt.f32.partialorder %v1167_v11, 0.0  ;;  %818 = vmatpush.bf16.msra.mxu0 %v807_v44 }
 0x287   : > { %v754_v10 = vsel %vm752_vm2, 0.0, %v1565_v9  ;;  %v755_v28 = vsel %vm753_vm6, 0.0, %v1565_v9 }
 0x28b   : > { %922 = vadd.xlane.f32.xlu0 %v919_v60 }
 0x28c   : > { %847 = vadd.xlane.f32.xlu2 %v844_v61  ;;  %771 = vadd.xlane.f32.xlu1 %v768_v62 }
 0x2f6   : > { %v921_v3 = vpop.xlane.xlu0 %920 }
 0x2f7   : > { %v926_v4 = vadd.f32 %v1304_v1, %v921_v3  ;;  %v846_v5 = vpop.xlane.xlu2 %845  ;;  %v770_v6 = vpop.xlane.xlu1 %769 }
 0x2f8   : > { %v775_v8 = vadd.f32 %v1306_v2, %v770_v6  ;;  %v851_v20 = vadd.f32 %v1305_v12, %v846_v5 }
 0x2f9   : > { %vm928_vm3 = vcmp.gt.f32.partialorder %v926_v4, 0.0  ;;  %v930_v7 = vmul.f32 0.2, %v926_v4 }
 0x2fa   : > { %vm777_vm4 = vcmp.gt.f32.partialorder %v775_v8, 0.0  ;;  %v779_v13 = vmul.f32 0.2, %v775_v8  ;;  %v855_v30 = vmul.f32 0.2, %v851_v20  ;;  %vm853_vm10 = vcmp.gt.f32.partialorder %v851_v20, 0.0 }
 0x2fb   : > { %v932_v14 = vsel %vm928_vm3, %v926_v4, %v930_v7 }
 0x2fc   : > { %v934_v15 = vadd.f32 %v932_v14, %v754_v10  ;;  %v781_v16 = vsel %vm777_vm4, %v775_v8, %v779_v13  ;;  %v857_v40 = vsel %vm853_vm10, %v851_v20, %v855_v30  ;;  %v1307_v20 = vld [vmem:[%s1796_s8] ss:$0 sm:$0xff] }
 0x2fd   : > { %v783_v19 = vadd.f32 %v781_v16, %v754_v10  ;;  %v859_v42 = vadd.f32 %v857_v40, %v754_v10 }
 0x2fe   : > { %v923_v17 = vpop.xlane.xlu0 %922  ;;  %v936_v18 = vsel %vm785_vm5, %v934_v15, -inf }
 0x2ff   : > { %v927_v21 = vadd.f32 %v1304_v1, %v923_v17  ;;  %v848_v22 = vpop.xlane.xlu2 %847  ;;  %937 = vmax.xlane.f32.xlu0 %v936_v18  ;;  %v772_v24 = vpop.xlane.xlu1 %771  ;;  %v786_v25 = vsel %vm785_vm5, %v783_v19, -inf  ;;  %v861_v43 = vsel %vm785_vm5, %v859_v42, -inf }
 0x300   : > { %v852_v23 = vadd.f32 %v1305_v12, %v848_v22  ;;  %v776_v27 = vadd.f32 %v1306_v2, %v772_v24  ;;  %787 = vmax.xlane.f32.xlu2 %v786_v25 }
 0x301   : > { %vm929_vm7 = vcmp.gt.f32.partialorder %v927_v21, 0.0  ;;  %v931_v26 = vmul.f32 0.2, %v927_v21 }
 0x302   : > { %vm854_vm8 = vcmp.gt.f32.partialorder %v852_v23, 0.0  ;;  %v856_v29 = vmul.f32 0.2, %v852_v23  ;;  %vm778_vm9 = vcmp.gt.f32.partialorder %v776_v27, 0.0  ;;  %v780_v31 = vmul.f32 0.2, %v776_v27 }
 0x303   : > { %v933_v32 = vsel %vm929_vm7, %v927_v21, %v931_v26  ;;  %v1308_v26 = vld [vmem:[%s1796_s8 + $0x2] ss:$0 sm:$0xff] }
 0x304   : > { %v935_v33 = vadd.f32 %v933_v32, %v755_v28  ;;  %v858_v34 = vsel %vm854_vm8, %v852_v23, %v856_v29  ;;  %v782_v35 = vsel %vm778_vm9, %v776_v27, %v780_v31  ;;  %v1309_v32 = vld [vmem:[%s1796_s8 + $0x1] ss:$0 sm:$0xff] }
 0x305   : > { %v860_v36 = vadd.f32 %v858_v34, %v755_v28  ;;  %v784_v38 = vadd.f32 %v782_v35, %v755_v28 }
 0x306   : > { %v939_v37 = vsel %vm785_vm5, %v935_v33, -inf }
 0x307   : > { %940 = vmax.xlane.f32.xlu1 %v939_v37  ;;  %v864_v39 = vsel %vm785_vm5, %v860_v36, -inf  ;;  %v789_v41 = vsel %vm785_vm5, %v784_v38, -inf }
 0x308   : > { %790 = vmax.xlane.f32.xlu0 %v789_v41  ;;  %865 = vmax.xlane.f32.xlu2 %v864_v39 }
 0x30f   : > { %862 = vmax.xlane.f32.xlu1 %v861_v43 }
 0x372   : > { %v938_v47 = vpop.xlane.xlu0 %937 }
 0x373   : > { %v788_v49 = vpop.xlane.xlu2 %787  ;;  %v942_v52 = vsub.f32 %v934_v15, %v938_v47 }
 0x374   : > { %v792_v51 = vsub.f32 %v783_v19, %v788_v49 }
 0x375   : > { %v944_v55 = vmul.f32 1.442695, %v942_v52 }
 0x376   : > { %v794_v54 = vmul.f32 1.442695, %v792_v51 }
 0x378   : > { %1310 = vpow2.f32 %v794_v54 }
 0x379   : > { %1312 = vpow2.f32 %v944_v55 }
 0x37a   : > { %v941_v56 = vpop.xlane.xlu1 %940 }
 0x37b   : > { %v943_v60 = vsub.f32 %v935_v33, %v941_v56  ;;  %v791_v61 = vpop.xlane.xlu0 %790  ;;  %v866_v53 = vpop.xlane.xlu2 %865 }
 0x37c   : > { %v793_v62 = vsub.f32 %v784_v38, %v791_v61  ;;  %v868_v48 = vsub.f32 %v860_v36, %v866_v53 }
 0x37d   : > { %v946_v59 = vmul.f32 1.442695, %v943_v60 }
 0x37e   : > { %v1311_v57 = vpop.eup %1310  ;;  %v796_v63 = vmul.f32 1.442695, %v793_v62  ;;  %v871_v50 = vmul.f32 1.442695, %v868_v48 }
 0x37f   : > { %1314 = vpow2.f32 %v946_v59  ;;  %v798_v58 = vsel %vm785_vm5, %v1311_v57, 0.0  ;;  %v1313_v2 = vpop.eup %1312 }
 0x380   : > { %1316 = vpow2.f32 %v796_v63  ;;  %799 = vadd.xlane.f32.xlu0 %v798_v58  ;;  %v948_v14 = vsel %vm785_vm5, %v1313_v2, 0.0 }
 0x381   : > { %1318 = vpow2.f32 %v871_v50 }
 0x382   : > { %v863_v0 = vpop.xlane.xlu1 %862 }
 0x383   : > { %v867_v1 = vsub.f32 %v859_v42, %v863_v0 }
 0x385   : > { %v1315_v3 = vpop.eup %1314  ;;  %v869_v4 = vmul.f32 1.442695, %v867_v1 }
 0x386   : > { %v956_v5 = vpack.c.bf16 %v1315_v3, %v1313_v2  ;;  %v1317_v6 = vpop.eup %1316  ;;  %v951_v15 = vsel %vm785_vm5, %v1315_v3, 0.0 }
 0x387   : > { %1320 = vpow2.f32 %v869_v4  ;;  %v1319_v7 = vpop.eup %1318  ;;  %v801_v8 = vsel %vm785_vm5, %v1317_v6, 0.0  ;;  %v806_v9 = vpack.c.bf16 %v1317_v6, %v1311_v57 }
 0x388   : > { %1150 = vmatmul.msk.bf16.vlgmr.msra.gmra.mxu2 %vm785_vm5, %v956_v5  ;;  %802 = vadd.xlane.f32.xlu1 %v801_v8  ;;  %v876_v10 = vsel %vm785_vm5, %v1319_v7, 0.0 }
 0x389   : > { %877 = vadd.xlane.f32.xlu0 %v876_v10  ;;  %1148 = vmatmul.msk.bf16.vlgmr.msra.gmra.mxu0 %vm785_vm5, %v806_v9 }
 0x38d   : > { %v1321_v11 = vpop.eup %1320 }
 0x38e   : > { %v873_v12 = vsel %vm785_vm5, %v1321_v11, 0.0  ;;  %v881_v13 = vpack.c.bf16 %v1319_v7, %v1321_v11 }
 0x38f   : > { %874 = vadd.xlane.f32.xlu2 %v873_v12 }
 0x390   : > { %1149 = vmatmul.msk.bf16.vlgmr.msra.gmra.mxu1 %vm785_vm5, %v881_v13  ;;  %949 = vadd.xlane.f32.xlu1 %v948_v14 }
 0x397   : > { %952 = vadd.xlane.f32.xlu2 %v951_v15 }
 0x3f3   : > { %v800_v17 = vpop.xlane.xlu0 %799 }
 0x3f4   : > { %1322 = vrcp.f32 %v800_v17 }
 0x3fa   : > { %v1323_v21 = vpop.eup %1322 }
 0x3fb   : > { %v803_v16 = vpop.xlane.xlu1 %802 }
 0x3fc   : > { %v878_v29 = vpop.xlane.xlu0 %877 }
 0x402   : > { %v875_v18 = vpop.xlane.xlu2 %874 }
 0x403   : > { %v950_v19 = vpop.xlane.xlu1 %949 }
 0x404   : > { %1324 = vrcp.f32 %v950_v19 }
 0x405   : > { %1326 = vrcp.f32 %v875_v18 }
 0x406   : > { %v820_v22 = vpop.f32.mrf.mxu0  ;;  %1328 = vrcp.f32 %v803_v16 }
 0x407   : > { %v825_v23 = vmul.f32 %v1323_v21, %v820_v22 }
 0x409   : > { %v831_v24 = vadd.f32 %v1307_v20, %v825_v23 }
 0x40a   : > { %v953_v25 = vpop.xlane.xlu2 %952  ;;  %v1325_v27 = vpop.eup %1324 }
 0x40b   : > { %v970_v28 = vpop.f32.mrf.mxu2  ;;  %v833_v30 = vmax.f32 %v831_v24, 0.0  ;;  %v1327_v33 = vpop.eup %1326  ;;  %1330 = vrcp.f32 %v953_v25 }
 0x40c   : > { %v975_v31 = vmul.f32 %v1325_v27, %v970_v28  ;;  %v1329_v37 = vpop.eup %1328  ;;  %1332 = vrcp.f32 %v878_v29 }
 0x40d   : > { %v895_v34 = vpop.f32.mrf.mxu1  ;;  %835 = vst [vmem:[#allocation14] sm:$0xff] %v833_v30 }
 0x40e   : > { %v981_v35 = vadd.f32 %v1308_v26, %v975_v31  ;;  %v900_v36 = vmul.f32 %v1327_v33, %v895_v34  ;;  %v822_v38 = vpop.f32.mrf.mxu0 }
 0x40f   : > { %v826_v40 = vmul.f32 %v1329_v37, %v822_v38 }
 0x410   : > { %v983_v39 = vmax.f32 %v981_v35, 0.0  ;;  %v906_v41 = vadd.f32 %v1309_v32, %v900_v36 }
 0x411   : > { %v832_v42 = vadd.f32 %v1307_v20, %v826_v40  ;;  %v1331_v44 = vpop.eup %1330 }
 0x412   : > { %985 = vst [vmem:[#allocation14 + $0x10] sm:$0xff] %v983_v39  ;;  %v908_v43 = vmax.f32 %v906_v41, 0.0  ;;  %v1333_v49 = vpop.eup %1332 }
 0x413   : > { %v972_v45 = vpop.f32.mrf.mxu2  ;;  %v834_v46 = vmax.f32 %v832_v42, 0.0 }
 0x414   : > { %910 = vst [vmem:[#allocation14 + $0x8] sm:$0xff] %v908_v43  ;;  %v976_v47 = vmul.f32 %v1331_v44, %v972_v45 }
 0x415   : > { %v897_v51 = vpop.f32.mrf.mxu1  ;;  %836 = vst [vmem:[#allocation14 + $0x18] sm:$0xff] %v834_v46 }
 0x416   : > { %v982_v52 = vadd.f32 %v1308_v26, %v976_v47  ;;  %v901_v54 = vmul.f32 %v1333_v49, %v897_v51 }
 0x418   : > { %v984_v55 = vmax.f32 %v982_v52, 0.0  ;;  %v907_v56 = vadd.f32 %v1309_v32, %v901_v54 }
 0x41a   : > { %986 = vst [vmem:[#allocation14 + $0x28] sm:$0xff] %v984_v55  ;;  %v909_v60 = vmax.f32 %v907_v56, 0.0 }
 0x41c   : > { %911 = vst [vmem:[#allocation14 + $0x20] sm:$0xff] %v909_v60 }
 0x41d PF: > { %s1802_s17 = sadd.s32 4294967295, %s1550_s11   ;;  %s1004_s22 = sshll.u32 %s1797_s9, 4  ;;  %s1005_s22 = int_to_ptr.hbm [resolvable:$true] %s1004_s22 }
 0x41e   : > { %p1254_p11 = scmp.eq.s32.totalorder %s1802_s17, 1  ;;  %s1566_s14 = smov [#allocation14]  }
 0x41f   : > { %s1002_s20 = sshll.u32 %s1566_s14, 4  ;;  %s1567_s23 = smov 384   ;;  %s1003_s20 = int_to_ptr.vmem [resolvable:$true] %s1002_s20 }
 0x420   : > { %s1568_s26 = smov 24  }
 0x421   : > { %1221 = dma.vmem_to_hbm [thread:$0]  (%p1254_p11), %s1003_s20, 768, %s1005_s22, [#allocation7], %s1567_s23, %s1567_s23, %s1568_s26  }
 0x422 PF: > { %p1255_p12 = scmp.ge.s32.totalorder %s1550_s11, 2  ;;  %s1803_s27 = sadd.s32 4294967294, %s1550_s11  }
 0x423   : > { %p1256_p13 = scmp.eq.s32.totalorder %s1803_s27, 1 }
 0x425   : > { %p1241_p0 = pnand %p1256_p13, %p1255_p12 }
 0x427   : > { %p1242_p1 = pneg %p1241_p0 }
 0x429   : > { %1537 = dma.done.wait (%p1242_p1), [#allocation7], 768  }
 0x42a   : > { %1539 = vsyncadd (%p1242_p1), [#allocation7], 4294966528  ;;  %s25_s11 = sadd.s32 1, %s1550_s11   ;;  %s1804_s30 = smov %s1546_s10 }
 0x42b   : > { %p22_p2 = scmp.ge.s32.totalorder %s25_s11, 4   ;;  %s1805_s10 = smov %s1807_s29 }
 0x42d   :  { %24 = sbr.rel (!%p22_p2) target bundleno = 6 (0x6), region = 129 }
 0x432   :  { %1026 = vsyncpa [#allocation6], 1 }
 0x433   :  { %1028 = vsyncpa [#allocation6 + $0x1], 1 }
 0x434   :  { %1029 = vsyncpa [#allocation9], 1 }
 0x435   :  { %1030 = vsyncpa [#allocation12], 1 }
 0x436   :  { %1031 = vsyncpa [#allocation7], 1 }
 0x437   :  { %1033 = vsyncpa [#allocation7 + $0x1], 1 }

</bundles_post_ra>
